<compile_context>
chip_gen: v7x
topology: tpu7x:2x2x1
jax: 0.10.0
libtpu: 0.0.40
codegen_flags: <defaults>
</compile_context>

<pallas_src>
import functools

import jax
import jax.numpy as jnp
from jax.experimental import pallas as pl
from jax.experimental.pallas import tpu as pltpu

BN_EPS = 1e-5


def _vmem_capacity_bytes() -> int:
    """Best-effort per-TensorCore VMEM capacity; conservative fallback (v7x)."""
    try:
        info = pltpu.get_tpu_info()
        cap = getattr(info, "vmem_capacity_bytes", None)
        if cap:
            return int(cap)
    except Exception:
        pass
    return 64 << 20


def _pick_cout_tile(cout: int) -> int:
    """Cout tile for pass 2: full if small, else MXU-native 256/128 if it divides."""
    if cout <= 256:
        return cout
    for t in (256, 128):
        if cout % t == 0:
            return t
    return cout  # uncommon non-multiple: keep full; T formula below adapts.


def _round_down_multiple(x: int, m: int) -> int:
    return (x // m) * m


def _pick_hw_tiling(hw, n, cin, cout, co_t, bpe, tile_budget):
    """Pick spatial tile T (multiple of 128, or == hw) and padded HW it divides."""
    # Per-lane VMEM bytes across both passes: double-buffered x, double-buffered
    # output (Cout tile), plus f32 y / y^2 intermediates of the stats pass.
    per_lane = 2 * cin * bpe + 2 * co_t * bpe + 8 * max(cout, co_t)
    t_budget = max(128, _round_down_multiple(tile_budget // per_lane, 128))

    if hw <= t_budget:
        t, hw_pad = hw, hw
    else:
        # Prefer a multiple-of-128 divisor of hw (no padding), else pad hw up.
        t = 0
        for cand in range(_round_down_multiple(t_budget, 128), 127, -128):
            if hw % cand == 0:
                t = cand
                break
        if t == 0:
            t = _round_down_multiple(t_budget, 128)
        hw_pad = -(-hw // t) * t

    # v7x megacore / pipeline priming: give the grid a few steps if it is tiny.
    while n * (hw_pad // t) < 4 and t % 256 == 0:
        t //= 2
    return t, hw_pad


def _stats_kernel(x_ref, w_ref, sum_ref, sumsq_ref):
    # x_ref: (1, Cin, T); w_ref: (Cout, Cin)
    # sum_ref / sumsq_ref: (1, Cout, 1) f32 per-batch accumulators, resident
    # across the spatial-tile ("arbitrary") grid axis.
    @pl.when(pl.program_id(1) == 0)
    def _():
        sum_ref[...] = jnp.zeros_like(sum_ref)
        sumsq_ref[...] = jnp.zeros_like(sumsq_ref)

    # 1x1 conv for this spatial tile on the MXU with f32 accumulation.
    y = jnp.dot(w_ref[...], x_ref[0], preferred_element_type=jnp.float32)
    sum_ref[...] += jnp.sum(y, axis=1, keepdims=True)[None, :, :]
    sumsq_ref[...] += jnp.sum(y * y, axis=1, keepdims=True)[None, :, :]


def _apply_kernel(x_ref, w_ref, scale_ref, shift_ref, o_ref, *, relu):
    # Recompute the cheap memory-bound 1x1 conv (avoids an HBM round trip of y)
    # and apply the folded BN affine: y*scale + shift (+ ReLU).
    y = jnp.dot(w_ref[...], x_ref[0], preferred_element_type=jnp.float32)
    out = y * scale_ref[...] + shift_ref[...]  # (Ct, T) * (Ct, 1) + (Ct, 1)
    if relu:
        out = jnp.maximum(out, 0.0)
    o_ref[0] = out.astype(o_ref.dtype)


def conv_bn_forward(x_nchw, weight, bias, gamma, beta, *, relu=False):
    """x_nchw: (N, Cin, H, W); weight: (Cout, Cin, 1, 1); bias/gamma/beta: (Cout,).

    Implements conv(k=1,s=1,p=0) -> BatchNorm2d (training-mode batch stats,
    biased variance, eps=1e-5) -> optional ReLU.
    """
    N, Cin, H, W = x_nchw.shape
    Cout = weight.shape[0]
    HW = H * W
    M = N * HW
    bpe = jnp.dtype(x_nchw.dtype).itemsize

    vmem_cap = _vmem_capacity_bytes()
    vmem_limit = min(int(vmem_cap * 3 // 4), 64 << 20)
    tile_budget = min(vmem_limit // 2, 24 << 20)

    co_t = _pick_cout_tile(Cout)
    T, HW_pad = _pick_hw_tiling(HW, N, Cin, Cout, co_t, bpe, tile_budget)
    n_t = HW_pad // T
    n_co = Cout // co_t

    # Free reshape only (no transpose): keep H*W on the lane axis.
    x = x_nchw.reshape(N, Cin, HW)
    if HW_pad != HW:
        # Zero padding: y = W @ 0 = 0 there (no in-kernel bias), so the padded
        # columns contribute nothing to sum / sumsq; outputs there are sliced off.
        x = jnp.pad(x, ((0, 0), (0, 0), (0, HW_pad - HW)))
    w = weight.reshape(Cout, Cin)
    del bias  # cancelled exactly by the training-mode BN batch-mean subtraction
    # TODO(synk): running_mean / running_var buffer updates of BatchNorm2d are not
    # emitted (the forward output does not depend on them).

    # ---- Pass 1: per-(batch, channel) partial sum / sum-of-squares of y = W@x ----
    stats_cost = pl.CostEstimate(
        flops=2 * N * HW_pad * Cin * Cout + 3 * N * HW_pad * Cout,
        transcendentals=0,
        bytes_accessed=bpe * (N * HW_pad * Cin + Cin * Cout) + 8 * N * Cout,
    )
    part_sum, part_sumsq = pl.pallas_call(
        _stats_kernel,
        out_shape=(
            jax.ShapeDtypeStruct((N, Cout, 1), jnp.float32),
            jax.ShapeDtypeStruct((N, Cout, 1), jnp.float32),
        ),
        grid=(N, n_t),
        in_specs=[
            pl.BlockSpec((1, Cin, T), lambda n, t: (n, 0, t)),
            pl.BlockSpec((Cout, Cin), lambda n, t: (0, 0)),
        ],
        out_specs=(
            pl.BlockSpec((1, Cout, 1), lambda n, t: (n, 0, 0)),
            pl.BlockSpec((1, Cout, 1), lambda n, t: (n, 0, 0)),
        ),
        compiler_params=pltpu.CompilerParams(
            dimension_semantics=("parallel", "arbitrary"),
            vmem_limit_bytes=vmem_limit,
        ),
        cost_estimate=stats_cost,
    )(x, w)

    # Tiny (Cout,) follow-up math in plain XLA: fold BN into a per-channel affine.
    ch_sum = jnp.sum(part_sum[:, :, 0], axis=0)
    ch_sumsq = jnp.sum(part_sumsq[:, :, 0], axis=0)
    mean = ch_sum / M
    var = jnp.maximum(ch_sumsq / M - mean * mean, 0.0)  # clamp fp cancellation
    inv_std = jax.lax.rsqrt(var + BN_EPS)
    scale = (gamma.astype(jnp.float32) * inv_std).reshape(Cout, 1)
    shift = beta.astype(jnp.float32).reshape(Cout, 1) - mean.reshape(Cout, 1) * scale

    # ---- Pass 2: recompute conv, apply scale/shift (+ReLU), write NCHW output ----
    apply_cost = pl.CostEstimate(
        flops=2 * N * HW_pad * Cin * Cout + 3 * N * HW_pad * Cout,
        transcendentals=0,
        bytes_accessed=bpe * (N * HW_pad * (Cin + Cout) + Cin * Cout) + 8 * Cout,
    )
    out_flat = pl.pallas_call(
        functools.partial(_apply_kernel, relu=relu),
        out_shape=jax.ShapeDtypeStruct((N, Cout, HW_pad), x_nchw.dtype),
        grid=(N, n_t, n_co),  # Cout tile innermost: x block stays resident across it
        in_specs=[
            pl.BlockSpec((1, Cin, T), lambda n, t, c: (n, 0, t)),
            pl.BlockSpec((co_t, Cin), lambda n, t, c: (c, 0)),
            pl.BlockSpec((co_t, 1), lambda n, t, c: (c, 0)),
            pl.BlockSpec((co_t, 1), lambda n, t, c: (c, 0)),
        ],
        out_specs=pl.BlockSpec((1, co_t, T), lambda n, t, c: (n, c, t)),
        compiler_params=pltpu.CompilerParams(
            dimension_semantics=("parallel", "parallel", "arbitrary"),
            vmem_limit_bytes=vmem_limit,
        ),
        cost_estimate=apply_cost,
    )(x, w, scale, shift)

    if HW_pad != HW:
        out_flat = out_flat[:, :, :HW]
    return out_flat.reshape(N, Cout, H, W)


def _reference(x, weight, bias, gamma, beta, relu):
    Cout, Cin = weight.shape[0], weight.shape[1]
    y = jnp.einsum("oc,nchw->nohw", weight.reshape(Cout, Cin), x)
    y = y + bias[None, :, None, None]
    mean = jnp.mean(y, axis=(0, 2, 3), keepdims=True)
    var = jnp.mean((y - mean) ** 2, axis=(0, 2, 3), keepdims=True)
    out = (y - mean) * jax.lax.rsqrt(var + BN_EPS)
    out = out * gamma[None, :, None, None] + beta[None, :, None, None]
    if relu:
        out = jnp.maximum(out, 0.0)
    return out


if __name__ == "__main__":
    key = jax.random.PRNGKey(0)
    kx, kw, kb, kg, kbe, kx2 = jax.random.split(key, 6)

    # Small shapes consistent with the module defaults (kernel_size=1).
    N, Cin, Cout, Hs, Ws = 2, 4, 8, 16, 16

    x = jax.random.normal(kx, (N, Cin, Hs, Ws), dtype=jnp.float32)
    weight = jax.random.normal(kw, (Cout, Cin, 1, 1), dtype=jnp.float32) * 0.1
    bias = jax.random.normal(kb, (Cout,), dtype=jnp.float32) * 0.1
    gamma = 1.0 + 0.1 * jax.random.normal(kg, (Cout,), dtype=jnp.float32)
    beta = 0.1 * jax.random.normal(kbe, (Cout,), dtype=jnp.float32)

    out = conv_bn_forward(x, weight, bias, gamma, beta, relu=True)
    jax.block_until_ready(out)
    assert out.shape == (N, Cout, Hs, Ws)
    ref = _reference(x, weight, bias, gamma, beta, relu=True)
    assert jnp.allclose(out, ref, atol=1e-3, rtol=1e-3)

    # Non-128-multiple spatial size (exercises the T == full-HW block path).
    x2 = jax.random.normal(kx2, (N, Cin, 10, 10), dtype=jnp.float32)
    out2 = conv_bn_forward(x2, weight, bias, gamma, beta, relu=False)
    jax.block_until_ready(out2)
    ref2 = _reference(x2, weight, bias, gamma, beta, relu=False)
    assert jnp.allclose(out2, ref2, atol=1e-3, rtol=1e-3)

    # TODO(synk): general kernel_size>1 / stride / padding conv is not handled
    # (module defaults are k=1, s=1, p=0, which this kernel implements exactly).
    print("KERNEL_OK")
</pallas_src>

<mosaic_0001>
module attributes {stable_mosaic.version = 11 : i64} {
  func.func @_stats_kernel(%arg0: i32, %arg1: i32, %arg2: memref<1x4x128xf32, #tpu.memory_space<vmem>>, %arg3: memref<8x4xf32, #tpu.memory_space<vmem>>, %arg4: memref<1x8x1xf32, #tpu.memory_space<vmem>>, %arg5: memref<1x8x1xf32, #tpu.memory_space<vmem>>) attributes {dimension_semantics = [#tpu.dimension_semantics<parallel>, #tpu.dimension_semantics<arbitrary>], iteration_bounds = array<i64: 2, 2>, scalar_prefetch = 0 : i64, scratch_operands = 0 : i64, tpu.core_type = #tpu.core_type<tc>, window_params = [{transform_indices = @transform_0, window_bounds = array<i64: 1, 4, 128>}, {pipeline_mode = #tpu.pipeline_mode<synchronous>, transform_indices = @transform_1, window_bounds = array<i64: 8, 4>}, {transform_indices = @transform_2, window_bounds = array<i64: 1, 8, 1>}, {transform_indices = @transform_3, window_bounds = array<i64: 1, 8, 1>}]} {
    %c0_i32 = arith.constant 0 : i32
    %0 = arith.cmpi eq, %arg1, %c0_i32 : i32
    %1 = arith.extui %0 : i1 to i32
    %c0_i32_0 = arith.constant 0 : i32
    %2 = arith.cmpi ne, %1, %c0_i32_0 : i32
    scf.if %2 {
      %cst_19 = arith.constant 0.000000e+00 : f32
      %20 = vector.broadcast %cst_19 : f32 to vector<1x8x1xf32>
      %c0_20 = arith.constant 0 : index
      %c0_21 = arith.constant 0 : index
      %c0_22 = arith.constant 0 : index
      %21 = vector.load %arg4[%c0_20, %c0_21, %c0_22] : memref<1x8x1xf32, #tpu.memory_space<vmem>>, vector<1x8x1xf32>
      tpu.vector_store %arg4[%c0_20, %c0_21, %c0_22], %20 {strides = array<i32>} : memref<1x8x1xf32, #tpu.memory_space<vmem>>, vector<1x8x1xf32>,
      %cst_23 = arith.constant 0.000000e+00 : f32
      %22 = vector.broadcast %cst_23 : f32 to vector<1x8x1xf32>
      %c0_24 = arith.constant 0 : index
      %c0_25 = arith.constant 0 : index
      %c0_26 = arith.constant 0 : index
      %23 = vector.load %arg5[%c0_24, %c0_25, %c0_26] : memref<1x8x1xf32, #tpu.memory_space<vmem>>, vector<1x8x1xf32>
      tpu.vector_store %arg5[%c0_24, %c0_25, %c0_26], %22 {strides = array<i32>} : memref<1x8x1xf32, #tpu.memory_space<vmem>>, vector<1x8x1xf32>,
    } else {
    }
    %c0 = arith.constant 0 : index
    %c0_1 = arith.constant 0 : index
    %3 = vector.load %arg3[%c0, %c0_1] : memref<8x4xf32, #tpu.memory_space<vmem>>, vector<8x4xf32>
    %c0_2 = arith.constant 0 : index
    %c0_3 = arith.constant 0 : index
    %c0_4 = arith.constant 0 : index
    %4 = vector.load %arg2[%c0_2, %c0_3, %c0_4] : memref<1x4x128xf32, #tpu.memory_space<vmem>>, vector<1x4x128xf32>
    %5 = vector.shape_cast %4 : vector<1x4x128xf32> to vector<4x128xf32>
    %cst = arith.constant dense<0.000000e+00> : vector<8x128xf32>
    %6 = tpu.matmul %3, %5, %cst {dimension_numbers = #tpu.dot_dimension_numbers<[1], [0], [0], [1], [0, 0, 1, 1], [], []>} : vector<8x4xf32>, vector<4x128xf32>, vector<8x128xf32> -> vector<8x128xf32>
    %c0_5 = arith.constant 0 : index
    %c0_6 = arith.constant 0 : index
    %c0_7 = arith.constant 0 : index
    %7 = vector.load %arg4[%c0_5, %c0_6, %c0_7] : memref<1x8x1xf32, #tpu.memory_space<vmem>>, vector<1x8x1xf32>
    %cst_8 = arith.constant dense<0.000000e+00> : vector<8xf32>
    %8 = vector.multi_reduction <add>, %6, %cst_8 [1] : vector<8x128xf32> to vector<8xf32>
    %9 = vector.shape_cast %8 : vector<8xf32> to vector<8x1xf32>
    %10 = vector.shape_cast %9 : vector<8x1xf32> to vector<1x8x1xf32>
    %11 = arith.addf %7, %10 : vector<1x8x1xf32>
    %c0_9 = arith.constant 0 : index
    %c0_10 = arith.constant 0 : index
    %c0_11 = arith.constant 0 : index
    %12 = vector.load %arg4[%c0_9, %c0_10, %c0_11] : memref<1x8x1xf32, #tpu.memory_space<vmem>>, vector<1x8x1xf32>
    tpu.vector_store %arg4[%c0_9, %c0_10, %c0_11], %11 {strides = array<i32>} : memref<1x8x1xf32, #tpu.memory_space<vmem>>, vector<1x8x1xf32>,
    %c0_12 = arith.constant 0 : index
    %c0_13 = arith.constant 0 : index
    %c0_14 = arith.constant 0 : index
    %13 = vector.load %arg5[%c0_12, %c0_13, %c0_14] : memref<1x8x1xf32, #tpu.memory_space<vmem>>, vector<1x8x1xf32>
    %14 = arith.mulf %6, %6 : vector<8x128xf32>
    %cst_15 = arith.constant dense<0.000000e+00> : vector<8xf32>
    %15 = vector.multi_reduction <add>, %14, %cst_15 [1] : vector<8x128xf32> to vector<8xf32>
    %16 = vector.shape_cast %15 : vector<8xf32> to vector<8x1xf32>
    %17 = vector.shape_cast %16 : vector<8x1xf32> to vector<1x8x1xf32>
    %18 = arith.addf %13, %17 : vector<1x8x1xf32>
    %c0_16 = arith.constant 0 : index
    %c0_17 = arith.constant 0 : index
    %c0_18 = arith.constant 0 : index
    %19 = vector.load %arg5[%c0_16, %c0_17, %c0_18] : memref<1x8x1xf32, #tpu.memory_space<vmem>>, vector<1x8x1xf32>
    tpu.vector_store %arg5[%c0_16, %c0_17, %c0_18], %18 {strides = array<i32>} : memref<1x8x1xf32, #tpu.memory_space<vmem>>, vector<1x8x1xf32>,
    return
  }
  func.func @transform_0(%arg0: i32, %arg1: i32) -> (i32, i32, i32) {
    %c0_i32 = arith.constant 0 : i32
    %c0_i32_0 = arith.constant 0 : i32
    return %arg0, %c0_i32, %arg1 : i32, i32, i32
  }
  func.func @transform_1(%arg0: i32, %arg1: i32) -> (i32, i32) {
    %c0_i32 = arith.constant 0 : i32
    %c0_i32_0 = arith.constant 0 : i32
    %c0_i32_1 = arith.constant 0 : i32
    return %c0_i32, %c0_i32_0 : i32, i32
  }
  func.func @transform_2(%arg0: i32, %arg1: i32) -> (i32, i32, i32) {
    %c0_i32 = arith.constant 0 : i32
    %c0_i32_0 = arith.constant 0 : i32
    %c0_i32_1 = arith.constant 0 : i32
    return %arg0, %c0_i32, %c0_i32_0 : i32, i32, i32
  }
  func.func @transform_3(%arg0: i32, %arg1: i32) -> (i32, i32, i32) {
    %c0_i32 = arith.constant 0 : i32
    %c0_i32_0 = arith.constant 0 : i32
    %c0_i32_1 = arith.constant 0 : i32
    return %arg0, %c0_i32, %c0_i32_0 : i32, i32, i32
  }
}

</mosaic_0001>

<bundles_post_ra>
// kernel: tpu_custom_call.1
= control target key start
LH: loop header
LB: loop body
LE: loop exit
PB: predicated region body
PF: predicated region fallthrough
CT: control target
= control target key end

     0   :  { %9 = vsyncpa [#allocation3], 0  ;;  %s802_s0 = inlined_call_operand.hbm [shape: f32[2,4,256], index: 0, kind: input, shape index: {}]   ;;  %s803_s1 = inlined_call_operand.vmem [shape: f32[8,4], index: 1, kind: input, shape index: {}]   ;;  %s804_s2 = inlined_call_operand.vmem [shape: f32[2,8,1], index: 2, kind: output, shape index: {0}]   ;;  %s805_s3 = inlined_call_operand.vmem [shape: f32[2,8,1], index: 3, kind: output, shape index: {1}]  }
   0x1   :  { %11 = vsyncpa [#allocation3 + $0x1], 0  ;;  %s640_s12 = smov 0   ;;  %s642_s13 = smov 0  }
   0x2   :  { %s644_s14 = smov 0   ;;  %s646_s15 = smov 0  }
   0x3   :  { %s648_s16 = smov 0   ;;  %s650_s17 = smov 0  }
   0x4   :  { %s652_s18 = smov 0   ;;  %s654_s19 = smov 0  }
   0x5 LB: > { %s421_s20 = sadd.s32 4294967295, %s614_s19   ;;  %s26_s21 = sadd.s32 1, %s606_s17  ;;  %s614_s19 = sphi %s654_s19, %s17_s19   ;;  %s610_s18 = sphi %s652_s18, %s817_s18   ;;  %s606_s17 = sphi %s650_s17, %s816_s17   ;;  %s602_s16 = sphi %s648_s16, %s815_s16   ;;  %s598_s15 = sphi %s646_s15, %s814_s15   ;;  %s594_s14 = sphi %s644_s14, %s813_s14   ;;  %s590_s13 = sphi %s642_s13, %s812_s13   ;;  %s586_s12 = sphi %s640_s12, %s811_s12  }
   0x6   : > { %p27_p0 = scmp.ge.s32.totalorder %s26_s21, 2  ;;  %s29_s22 = sadd.s32 1, %s610_s18 }
   0x7   : > { %s38_s23 = sadd.s32 1, %s594_s14  ;;  %p45_p1 = scmp.ne.s32.totalorder %s594_s14, %s590_s13 }
   0x8   : > { %s819_s21 = smov (%p27_p0, %s26_s21), 0  ;;  %s821_s22 = smov (!%p27_p0, %s29_s22), %s610_s18 }
   0x9   : > { %s34_s24 = ssub.s32 %s606_s17, %s819_s21  ;;  %p46_p2 = scmp.eq.s32.totalorder %s614_s19, 0 }
   0xa   : > { %p31_p3 = scmp.ge.s32.totalorder %s821_s22, 2  ;;  %p51_p4 = scmp.ne.s32.totalorder %s590_s13, %s586_s12 }
   0xb   : > { %p691_p5 = por %p46_p2, %p45_p1  ;;  %p52_p6 = scmp.eq.s32.totalorder %s421_s20, 0 }
   0xc   : > { %s823_s22 = smov (%p31_p3, %s821_s22), 0  ;;  %p450_p8 = scmp.lt.s32.totalorder %s614_s19, 4 }
   0xd   : > { %p697_p7 = por %p52_p6, %p51_p4  ;;  %s33_s27 = ssub.s32 %s610_s18, %s823_s22 }
   0xe   : > { %s35_s28 = sor.u32 %s34_s24, %s33_s27  ;;  %s151_s29 = sand.u32 1, %s594_s14  }
   0xf   : > { %p36_p9 = scmp.eq.s32.totalorder %s35_s28, 0  ;;  %s425_s30 = sshll.u32 %s151_s29, 2 }
  0x10   : > { %s426_s4 = sshll.u32 %s610_s18, 1  ;;  %s155_s8 = scalar_lea.vmem [#allocation2], %s425_s30 }
  0x11   : > { %s707_s5 = scalar_select %p36_p9, %s594_s14, %s38_s23  }
  0x12   : > { %s160_s6 = sadd.s32 %s606_s17, %s426_s4  ;;  %s164_s9 = sshll.u32 %s155_s8, 4  ;;  %s715_s9 = int_to_ptr.vmem [resolvable:$true] %s164_s9 }
  0x13   : > { %s427_s7 = sshll.u32 %s160_s6, 6  ;;  %p721_p10 = pnand %p450_p8, %p691_p5 }
  0x14   : > { %s713_s12 = scalar_lea.hbm %s802_s0, %s427_s7  ;;  %s152_s23 = scalar_lea.sflag [#allocation3], %s151_s29 }
  0x15   : > { %s518_s24 = scalar_lea.hbm %s713_s12, 64  ;;  %p520_p0 = pneg %p721_p10 }
  0x16   : > { %p519_p13 = scmp.ne.s32.totalorder %s713_s12, %s518_s24  ;;  %s523_s28 = scalar_lea.hbm %s802_s0, 256 }
  0x17   : > { %p524_p3 = scmp.lt.u32.totalorder %s713_s12, %s802_s0  ;;  %p525_p4 = scmp.lt.u32.totalorder %s523_s28, %s518_s24 }
  0x18   : > { %p521_p1 = pnand %p520_p0, %p519_p13  ;;  %p527_p6 = scmp.lt.u32.totalorder %s518_s24, %s713_s12 }
  0x19   : > { %p526_p5 = por %p525_p4, %p524_p3 }
  0x1a   : > { %p522_p2 = pneg %p521_p1 }
  0x1b   : > { %p528_p8 = por %p527_p6, %p526_p5 }
  0x1d   : > { %p529_p9 = pnand %p528_p8, %p522_p2 }
  0x1f   : > { %532 = shalt.err (!%p529_p9)
}
  0x20   : > { %s533_s29 = scalar_lea.vmem %s715_s9, 64  ;;  %s616_s6 = smov [#allocation2]  }
  0x21   : > { %p534_p13 = scmp.ne.s32.totalorder %s715_s9, %s533_s29  ;;  %s538_s7 = sshll.u32 %s616_s6, 4  ;;  %s539_s7 = int_to_ptr.vmem [resolvable:$false] %s538_s7 }
  0x22   : > { %s540_s8 = scalar_lea.vmem %s539_s7, 128  ;;  %p541_p12 = scmp.lt.s32.totalorder %s715_s9, %s539_s7 }
  0x23   : > { %p536_p1 = pnand %p534_p13, %p520_p0  ;;  %p542_p3 = scmp.lt.s32.totalorder %s540_s8, %s533_s29 }
  0x25   : > { %p537_p11 = pneg %p536_p1  ;;  %p543_p4 = por %p542_p3, %p541_p12 }
  0x27   : > { %p544_p5 = pnand %p543_p4, %p537_p11 }
  0x29   : > { %547 = shalt.err (!%p544_p5)
}
  0x2a   : > { %449 = dma.hbm_to_vmem [thread:$0]  (!%p721_p10), %s713_s12, 64, %s715_s9, %s152_s23  }
  0x2b   : > { %p809_p2 = scmp.lt.s32.totalorder %s614_s19, 5  ;;  %p810_p6 = scmp.ge.s32.totalorder %s614_s19, 1 }
  0x2d   : > { %p170_p0 = pnand %p810_p6, %p809_p2 }
  0x2e   : > { %s175_s10 = sand.u32 (!%p170_p0), 1, %s590_s13  }
  0x2f   : > { %173 = sbr.rel (%p170_p0) target bundleno = 428 (0x1ac), region = 28  ;;  %s429_s11 = sshll.u32 (!%p170_p0), %s175_s10, 2 }
  0x30   : > { %s176_s24 = scalar_lea.sflag (!%p170_p0), [#allocation3], %s175_s10  ;;  %s179_s27 = scalar_lea.vmem (!%p170_p0), [#allocation2], %s429_s11 }
  0x36   : > { %581 = dma.done.wait (%p697_p7), %s176_s24, 64  }
  0x37   : > { %583 = vsyncadd (%p697_p7), %s176_s24, 4294967232  ;;  %p205_p11 = scmp.lt.s32.totalorder %s602_s16, 1  ;;  %p432_p10 = scmp.ne.s32.totalorder %s598_s15, 0 }
  0x38   : > { %vm217_vm0 = vcmask (!%p432_p10), 7168   ;;  %v617_v0 = vmov (!%p432_p10), 0.0  }
  0x39   : > { %s825_s16 = smov (!%p205_p11, %s602_s16), 1  ;;  %216 = sbr.rel (%p432_p10) target bundleno = 64 (0x40), region = 36 }
  0x3a   : > { %s430_s9 = sshll.u32 %s825_s16, 3 }
  0x3b   : > { %s208_s23 = scalar_lea.vmem %s804_s2, %s430_s9  ;;  %s769_s30 = scalar_lea.vmem %s805_s3, %s430_s9 }
  0x3c   : > { %218 = vst.msk [vmem:[%s208_s23] sm:$0xff] (!%p432_p10), %vm217_vm0, %v617_v0  ;;  %219 = vst.msk [vmem:[%s769_s30] sm:$0xff] (!%p432_p10), %vm217_vm0, %v617_v0 }
  0x40 PF: > { %v221_v1 = vld [vmem:[%s179_s27] sm:$0xf]  ;;  %vm226_vm1 = vcmask 1043456   ;;  %v618_v3 = vmov 0.0   ;;  %vm619_vm2 = vmmov 0   ;;  %vm222_vm3 = vcmask 31744  }
  0x41   : > { %v220_v2 = vld [vmem:[%s803_s1] sm:$0xff]  ;;  %439 = vmatprep.subr.mxu0 %v618_v3  ;;  %441 = vmatprep.mubr.msk.f32.mxu0 %vm619_vm2, %v618_v3  ;;  %vm304_vm4 = vcmask 7168  }
  0x42   : > { %440 = vmatpush3.msk.msra.mxu0 %vm226_vm1, %v221_v1 }
  0x43   : > { %442 = vmatmul.mubr.msk.f32.vlgmr.msra.gmra.mrb[0].mxu0 %vm222_vm3, %v220_v2  ;;  %v300_v7 = vld [vmem:[%s208_s23] sm:$0xff] }
  0x44   : > { %v306_v10 = vld [vmem:[%s769_s30] sm:$0xff] }
 0x116   : > { %v296_v4 = vpop.f32.mrb[0].mxu0 }
 0x117   : > { %301 = vadd.xlane.f32.xlu0 %v296_v4  ;;  %v443_v5 = vpop.f32.mrb[1].mxu0  ;;  %v307_v6 = vmul.f32 %v296_v4, %v296_v4 }
 0x11b   : > { %308 = vadd.xlane.f32.xlu0 %v307_v6 }
 0x1a4   : > { %v302_v8 = vpop.xlane.xlu0 %301 }
 0x1a5   : > { %v303_v9 = vadd.f32 %v302_v8, %v300_v7 }
 0x1a7   : > { %305 = vst.msk [vmem:[%s208_s23] sm:$0xff] %vm304_vm4, %v303_v9 }
 0x1a8   : > { %v309_v11 = vpop.xlane.xlu0 %308 }
 0x1a9   : > { %v310_v12 = vadd.f32 %v309_v11, %v306_v10 }
 0x1ab   : > { %311 = vst.msk [vmem:[%s769_s30] sm:$0xff] %vm304_vm4, %v310_v12 }
 0x1ac PF: > { %s17_s19 = sadd.s32 1, %s614_s19   ;;  %s811_s12 = smov %s590_s13 }
 0x1ad   : > { %p14_p7 = scmp.ge.s32.totalorder %s17_s19, 6   ;;  %s812_s13 = smov %s594_s14 }
 0x1ae   : > { %s813_s14 = smov %s707_s5  ;;  %s814_s15 = smov %s606_s17 }
 0x1af   : > { %s815_s16 = smov %s610_s18  ;;  %s816_s17 = smov %s819_s21 }
 0x1b0   : > { %s817_s18 = smov %s823_s22  ;;  %16 = sbr.rel (!%p14_p7) target bundleno = 5 (0x5), region = 84 }
 0x1b7   :  { %345 = vsyncpa [#allocation3], 1 }
 0x1b8   :  { %347 = vsyncpa [#allocation3 + $0x1], 1 }

</bundles_post_ra>
